<compile_context>
chip_gen: v5e
topology: v5e:2x2
jax: 0.10.0
libtpu: 0.0.40
codegen_flags: <defaults>
</compile_context>

<pallas_src>
import jax
import jax.numpy as jnp
from jax.experimental import pallas as pl
from jax.experimental.pallas import tpu as pltpu


def linear_clamp_kernel(x_ref, w_ref, b_ref, o_ref):
    # x_ref: (TB, IN), w_ref: (IN, OUT) [pre-transposed], b_ref: (1, OUT),
    # o_ref: (TB, OUT)
    x = x_ref[...]
    w = w_ref[...]
    # Tiny contraction (K=10, N=5): f32-accumulated dot; entirely hidden under
    # the block DMA, so no MXU-shape tuning is worthwhile.
    y = jnp.dot(x, w, preferred_element_type=jnp.float32)
    y = y + b_ref[...]
    # clamp_min(0.2) then clamp_max(0.8)  ==  clip to [0.2, 0.8]
    y = jnp.minimum(jnp.maximum(y, 0.2), 0.8)
    o_ref[...] = y.astype(o_ref.dtype)


def linear_clamp(x, weight, bias, *, tb=8192):
    """x: (B, IN) f32, weight: (OUT, IN) like torch Linear, bias: (OUT,)."""
    B, IN = x.shape
    OUT = weight.shape[0]

    # One-time layout prep in the wrapper (cheap XLA ops, outside the kernel).
    w_t = jnp.transpose(weight)        # (IN, OUT)
    bias2d = bias.reshape(1, OUT)      # (1, OUT)

    # Batch tile:
    #  - B <= tb: single block equal to the full batch (legal even if B % 8 != 0,
    #    since the block equals the full array dim).
    #  - B  > tb: TB = tb (multiple of 8); grid = cdiv(B, TB) and Pallas masks the
    #    ragged last block (garbage rows read in the last input block are never
    #    written back), so no jnp.pad HBM copy is needed.
    TB = B if B <= tb else tb
    grid = (pl.cdiv(B, TB),)

    out = pl.pallas_call(
        linear_clamp_kernel,
        out_shape=jax.ShapeDtypeStruct((B, OUT), x.dtype),
        grid_spec=pl.GridSpec(
            grid=grid,
            in_specs=[
                pl.BlockSpec((TB, IN), lambda i: (i, 0)),   # batch-tiled input
                pl.BlockSpec((IN, OUT), lambda i: (0, 0)),  # resident weight
                pl.BlockSpec((1, OUT), lambda i: (0, 0)),   # resident bias
            ],
            out_specs=pl.BlockSpec((TB, OUT), lambda i: (i, 0)),
        ),
        compiler_params=pltpu.CompilerParams(
            # Batch axis is independent -> "parallel" (sharded across the two
            # TensorCores on v7x; measured ~zero delta on single-TC v5e/v6e).
            dimension_semantics=("parallel",),
            # TB=8192: double-buffered x block (TB*512 B) + double-buffered out
            # block (TB*512 B) ~= 16 MiB, which exceeds v5e's 16 MiB default
            # scoped limit. 48 MiB gives headroom for Mosaic temporaries while
            # staying under v7x's 64 MiB per-TC physical VMEM.
            vmem_limit_bytes=48 * 1024 * 1024,
        ),
    )(x, w_t, bias2d)

    return out


if __name__ == "__main__":
    key = jax.random.PRNGKey(0)
    kx, kw, kb = jax.random.split(key, 3)

    B, IN, OUT = 2, 10, 5  # small shapes consistent with Linear(10, 5)

    # Deterministic parameter init (mimics torch.nn.Linear uniform init range)
    bound = 1.0 / (IN ** 0.5)
    weight = jax.random.uniform(kw, (OUT, IN), jnp.float32, -bound, bound)
    bias = jax.random.uniform(kb, (OUT,), jnp.float32, -bound, bound)
    x = jax.random.normal(kx, (B, IN), jnp.float32)

    out = linear_clamp(x, weight, bias)
    out = jax.block_until_ready(out)

    # Reference check in plain JAX
    ref = jnp.clip(x @ weight.T + bias, 0.2, 0.8)
    assert out.shape == (B, OUT)
    assert jnp.allclose(out, ref, atol=1e-5), "mismatch vs reference"

    print("KERNEL_OK")
</pallas_src>

<mosaic_0001>
module attributes {stable_mosaic.version = 11 : i64} {
  func.func @linear_clamp_kernel(%arg0: i32, %arg1: memref<2x10xf32, #tpu.memory_space<vmem>>, %arg2: memref<10x5xf32, #tpu.memory_space<vmem>>, %arg3: memref<1x5xf32, #tpu.memory_space<vmem>>, %arg4: memref<2x5xf32, #tpu.memory_space<vmem>>) attributes {dimension_semantics = [#tpu.dimension_semantics<parallel>], iteration_bounds = array<i64: 1>, scalar_prefetch = 0 : i64, scratch_operands = 0 : i64, tpu.core_type = #tpu.core_type<tc>, window_params = [{transform_indices = @transform_0, window_bounds = array<i64: 2, 10>}, {pipeline_mode = #tpu.pipeline_mode<synchronous>, transform_indices = @transform_1, window_bounds = array<i64: 10, 5>}, {pipeline_mode = #tpu.pipeline_mode<synchronous>, transform_indices = @transform_2, window_bounds = array<i64: 1, 5>}, {transform_indices = @transform_3, window_bounds = array<i64: 2, 5>}]} {
    %c0 = arith.constant 0 : index
    %c0_0 = arith.constant 0 : index
    %0 = vector.load %arg1[%c0, %c0_0] : memref<2x10xf32, #tpu.memory_space<vmem>>, vector<2x10xf32>
    %c0_1 = arith.constant 0 : index
    %c0_2 = arith.constant 0 : index
    %1 = vector.load %arg2[%c0_1, %c0_2] : memref<10x5xf32, #tpu.memory_space<vmem>>, vector<10x5xf32>
    %cst = arith.constant dense<0.000000e+00> : vector<2x5xf32>
    %2 = tpu.matmul %0, %1, %cst {dimension_numbers = #tpu.dot_dimension_numbers<[1], [0], [0], [1], [0, 0, 1, 1], [], []>} : vector<2x10xf32>, vector<10x5xf32>, vector<2x5xf32> -> vector<2x5xf32>
    %c0_3 = arith.constant 0 : index
    %c0_4 = arith.constant 0 : index
    %3 = vector.load %arg3[%c0_3, %c0_4] : memref<1x5xf32, #tpu.memory_space<vmem>>, vector<1x5xf32>
    %4 = vector.broadcast %3 : vector<1x5xf32> to vector<2x5xf32>
    %5 = arith.addf %2, %4 : vector<2x5xf32>
    %cst_5 = arith.constant 2.000000e-01 : f32
    %6 = vector.broadcast %cst_5 : f32 to vector<2x5xf32>
    %7 = arith.maximumf %5, %6 : vector<2x5xf32>
    %cst_6 = arith.constant 8.000000e-01 : f32
    %8 = vector.broadcast %cst_6 : f32 to vector<2x5xf32>
    %9 = arith.minimumf %7, %8 : vector<2x5xf32>
    %c0_7 = arith.constant 0 : index
    %c0_8 = arith.constant 0 : index
    %10 = vector.load %arg4[%c0_7, %c0_8] : memref<2x5xf32, #tpu.memory_space<vmem>>, vector<2x5xf32>
    tpu.vector_store %arg4[%c0_7, %c0_8], %9 {strides = array<i32>} : memref<2x5xf32, #tpu.memory_space<vmem>>, vector<2x5xf32>,
    return
  }
  func.func @transform_0(%arg0: i32) -> (i32, i32) {
    %c0_i32 = arith.constant 0 : i32
    %c0_i32_0 = arith.constant 0 : i32
    return %arg0, %c0_i32 : i32, i32
  }
  func.func @transform_1(%arg0: i32) -> (i32, i32) {
    %c0_i32 = arith.constant 0 : i32
    %c0_i32_0 = arith.constant 0 : i32
    %c0_i32_1 = arith.constant 0 : i32
    return %c0_i32, %c0_i32_0 : i32, i32
  }
  func.func @transform_2(%arg0: i32) -> (i32, i32) {
    %c0_i32 = arith.constant 0 : i32
    %c0_i32_0 = arith.constant 0 : i32
    %c0_i32_1 = arith.constant 0 : i32
    return %c0_i32, %c0_i32_0 : i32, i32
  }
  func.func @transform_3(%arg0: i32) -> (i32, i32) {
    %c0_i32 = arith.constant 0 : i32
    %c0_i32_0 = arith.constant 0 : i32
    return %arg0, %c0_i32 : i32, i32
  }
}

</mosaic_0001>

<bundles_post_ra>
// kernel: tpu_custom_call.1
= control target key start
LH: loop header
LB: loop body
LE: loop exit
PB: predicated region body
PF: predicated region fallthrough
CT: control target
= control target key end

     0   :  { %vm26_vm0 = vcmask 1041408   ;;  %vm22_vm1 = vcmask 80896   ;;  %s136_s0 = inlined_call_operand.vmem [shape: f32[2,10], index: 0, kind: input, shape index: {}]   ;;  %s137_s1 = inlined_call_operand.vmem [shape: f32[10,5], index: 1, kind: input, shape index: {}]   ;;  %s138_s2 = inlined_call_operand.vmem [shape: f32[1,5], index: 2, kind: input, shape index: {}]   ;;  %s139_s3 = inlined_call_operand.hbm [shape: f32[2,5], index: 3, kind: output, shape index: {}]  }
   0x1   :  { %v17_v0 = vld [vmem:[%s137_s1 + $0x8] sm:$0x3]  ;;  %v16_v1 = vld [vmem:[%s137_s1] sm:$0xff] }
   0x2   :  { %70 = vmatpush.msk.msra.mxu0 %vm26_vm0, %v17_v0  ;;  %v15_v2 = vld [vmem:[%s136_s0] sm:$0x3] }
   0x3   :  { %8 = vsyncpa [#allocation3], 0  ;;  %v73_v3 = vld [vmem:[%s138_s2] ss:$0 sm:$0xff]  ;;  %s100_s20 = smov [#allocation2]   ;;  %s61_s1 = sshll.u32 %s139_s3, 4  ;;  %s62_s1 = int_to_ptr.hbm [resolvable:$true] %s61_s1 }
   0x4   :  { %45 = vmatpush.msra.mxu0 %v16_v1  ;;  %s59_s21 = sshll.u32 %s100_s20, 4  ;;  %vm52_vm2 = vcmask 33792   ;;  %s60_s21 = int_to_ptr.vmem [resolvable:$true] %s59_s21 }
   0x5   :  { %71 = vmatmul.msk.f32.vlgmr.msra.gmra.mxu0 %vm22_vm1, %v15_v2 }
  0x82   :  { %v47_v4 = vpop.f32.mrf.mxu0 }
  0x83   :  { %v48_v5 = vadd.f32 %v73_v3, %v47_v4 }
  0x85   :  { %v50_v6 = vmax.f32 %v48_v5, 0.2 }
  0x87   :  { %v51_v7 = vmin.f32 %v50_v6, 0.8 }
  0x89   :  { %53 = vst.msk [vmem:[#allocation2] sm:$0x3] %vm52_vm2, %v51_v7 }
  0x8a   :  { %64 = dma.vmem_to_hbm [thread:$0]  %s60_s21, 32, %s62_s1, [#allocation3]  }
  0x8b   :  { %98 = dma.done.wait [#allocation3], 32  }
  0x8c   :  { %99 = vsyncadd [#allocation3], 4294967264 }
  0x8d   :  { %69 = vsyncpa [#allocation3], 1 }

</bundles_post_ra>
